<compile_context>
chip_gen: v6e
topology: v6e:2x2x1
jax: 0.10.0
libtpu: 0.0.40
codegen_flags: <defaults>
</compile_context>

<pallas_src>
import jax
import jax.numpy as jnp
from jax.experimental import pallas as pl
from jax.experimental.pallas import tpu as pltpu


def _round_up(x, m):
    return (x + m - 1) // m * m


# ----------------------------------------------------------------------------
# Kernel: one batch tile (TB lanes) of the whole 4-layer MLP, feature-major.
# ----------------------------------------------------------------------------
def _mlp_kernel(x_ref, w1_ref, wr_ref, o_ref):
    # x_ref : [8, TB]   rows 0-1 = (position, velocity), row 7 == 1.0 (bias carry)
    # w1_ref: [32, 8]   fc1 weight (rows 0..23, cols 0..1), bias in col 7,
    #                   row 31/col 7 == 1.0 propagates the carry
    # wr_ref: [72, 32]  = [fc2_aug (32,32); fc3_aug (32,32); fc4_aug (8,32)]
    # o_ref : [8, TB]   rows 0..2 = logits, rows 3..7 padding
    x = x_ref[...]
    h = jnp.maximum(
        jnp.dot(w1_ref[...], x, preferred_element_type=jnp.float32), 0.0)        # [32, TB]
    h = jnp.maximum(
        jnp.dot(wr_ref[0:32, :], h, preferred_element_type=jnp.float32), 0.0)    # [32, TB]
    h = jnp.maximum(
        jnp.dot(wr_ref[32:64, :], h, preferred_element_type=jnp.float32), 0.0)   # [32, TB]
    out = jnp.dot(wr_ref[64:72, :], h, preferred_element_type=jnp.float32)       # [8, TB]
    o_ref[...] = out.astype(o_ref.dtype)   # lane-dense, sublane-full unmasked store


def mountaincar_forward(x, w1_packed, wrest_packed, *, block_b=2048):
    """x: [B, 2] float32 -> [B, 3] float32."""
    B = x.shape[0]
    b_lanes = _round_up(max(B, 1), 128)                 # batch padded to lane tiles
    tb = min(_round_up(block_b, 128), b_lanes)
    if tb == b_lanes and b_lanes >= 256:
        # Ensure the batch grid has >=2 steps so both v7x TensorCores get work.
        tb = (b_lanes // 2) // 128 * 128
    b_pad = _round_up(b_lanes, tb)

    # Feature-major input: pad features 2 -> 8, bias-carry row 7 set to 1.0.
    x_t = jnp.zeros((8, b_pad), jnp.float32)
    x_t = x_t.at[:2, :B].set(x.T.astype(jnp.float32))
    x_t = x_t.at[7, :].set(1.0)

    out_pad = pl.pallas_call(
        _mlp_kernel,
        out_shape=jax.ShapeDtypeStruct((8, b_pad), jnp.float32),
        grid=(b_pad // tb,),
        in_specs=[
            pl.BlockSpec((8, tb), lambda i: (0, i)),      # activations (batch on lanes)
            pl.BlockSpec((32, 8), lambda i: (0, 0)),      # fc1 slab, VMEM-resident
            pl.BlockSpec((72, 32), lambda i: (0, 0)),     # fc2/3/4 slab, VMEM-resident
        ],
        out_specs=pl.BlockSpec((8, tb), lambda i: (0, i)),
        compiler_params=pltpu.CompilerParams(
            dimension_semantics=("parallel",)),           # megacore sharding on v7x
    )(x_t, w1_packed, wrest_packed)

    return out_pad[:3, :B].T


# ----------------------------------------------------------------------------
# Parameter construction / packing (torch.nn.Linear layout: W is [out, in],
# forward is x @ W.T + b).
# ----------------------------------------------------------------------------
def xavier_uniform(key, fan_out, fan_in, dtype=jnp.float32):
    limit = jnp.sqrt(6.0 / (fan_in + fan_out))
    return jax.random.uniform(key, (fan_out, fan_in), dtype=dtype,
                              minval=-limit, maxval=limit)


def init_params(key):
    dims = [(2, 24), (24, 24), (24, 24), (24, 3)]
    params = []
    keys = jax.random.split(key, 2 * len(dims))
    for i, (fi, fo) in enumerate(dims):
        w = xavier_uniform(keys[2 * i], fo, fi)          # [out, in], torch layout
        bound = 1.0 / jnp.sqrt(float(fi))                # torch Linear default bias init
        b = jax.random.uniform(keys[2 * i + 1], (fo,), dtype=jnp.float32,
                               minval=-bound, maxval=bound)
        params.append((w, b))
    return params


def pack_params(params):
    """Pack into two slabs: fc1 -> [32, 8]; fc2/fc3/fc4 -> [72, 32].

    Biases are stored as the last weight column; the padded row 31 carries a
    constant 1 through every hidden layer (input row 7 supplies the initial 1).
    """
    (w1, b1), (w2, b2), (w3, b3), (w4, b4) = params

    w1p = jnp.zeros((32, 8), jnp.float32)
    w1p = w1p.at[:24, :2].set(w1)
    w1p = w1p.at[:24, 7].set(b1)
    w1p = w1p.at[31, 7].set(1.0)          # propagate the ones-carry

    def aug_hidden(w, b):
        m = jnp.zeros((32, 32), jnp.float32)
        m = m.at[:24, :24].set(w)
        m = m.at[:24, 31].set(b)
        m = m.at[31, 31].set(1.0)         # propagate the ones-carry
        return m

    w4p = jnp.zeros((8, 32), jnp.float32)
    w4p = w4p.at[:3, :24].set(w4)
    w4p = w4p.at[:3, 31].set(b4)

    wrest = jnp.concatenate([aug_hidden(w2, b2), aug_hidden(w3, b3), w4p], axis=0)
    return w1p, wrest


def reference_forward(x, params):
    h = x
    for i, (w, b) in enumerate(params):
        h = h @ w.T + b
        if i < len(params) - 1:
            h = jnp.maximum(h, 0.0)
    return h


if __name__ == "__main__":
    key = jax.random.PRNGKey(0)
    pkey, xkey, xkey2 = jax.random.split(key, 3)

    params = init_params(pkey)
    w1p, wrp = pack_params(params)

    # MountainCar observation: [position, velocity] -> batch of 8 states.
    x = jax.random.normal(xkey, (8, 2), dtype=jnp.float32)
    out = jax.block_until_ready(mountaincar_forward(x, w1p, wrp))
    ref = reference_forward(x, params)
    assert out.shape == (8, 3), out.shape
    assert jnp.allclose(out, ref, atol=1e-4, rtol=1e-4), "mismatch vs reference (B=8)"

    # Non-multiple-of-128 batch -> 3 grid steps of 128 lanes each (multi-tile path).
    x2 = jax.random.normal(xkey2, (300, 2), dtype=jnp.float32)
    out2 = jax.block_until_ready(mountaincar_forward(x2, w1p, wrp))
    ref2 = reference_forward(x2, params)
    assert out2.shape == (300, 3), out2.shape
    assert jnp.allclose(out2, ref2, atol=1e-4, rtol=1e-4), "mismatch vs reference (B=300)"

    print("KERNEL_OK")
</pallas_src>

<mosaic_0001>
module attributes {stable_mosaic.version = 11 : i64} {
  func.func @_mlp_kernel(%arg0: i32, %arg1: memref<8x128xf32, #tpu.memory_space<vmem>>, %arg2: memref<32x8xf32, #tpu.memory_space<vmem>>, %arg3: memref<72x32xf32, #tpu.memory_space<vmem>>, %arg4: memref<8x128xf32, #tpu.memory_space<vmem>>) attributes {dimension_semantics = [#tpu.dimension_semantics<parallel>], iteration_bounds = array<i64: 1>, scalar_prefetch = 0 : i64, scratch_operands = 0 : i64, tpu.core_type = #tpu.core_type<tc>, window_params = [{transform_indices = @transform_0, window_bounds = array<i64: 8, 128>}, {pipeline_mode = #tpu.pipeline_mode<synchronous>, transform_indices = @transform_1, window_bounds = array<i64: 32, 8>}, {pipeline_mode = #tpu.pipeline_mode<synchronous>, transform_indices = @transform_2, window_bounds = array<i64: 72, 32>}, {transform_indices = @transform_3, window_bounds = array<i64: 8, 128>}]} {
    %c0 = arith.constant 0 : index
    %c0_0 = arith.constant 0 : index
    %0 = vector.load %arg1[%c0, %c0_0] : memref<8x128xf32, #tpu.memory_space<vmem>>, vector<8x128xf32>
    %c0_1 = arith.constant 0 : index
    %c0_2 = arith.constant 0 : index
    %1 = vector.load %arg2[%c0_1, %c0_2] : memref<32x8xf32, #tpu.memory_space<vmem>>, vector<32x8xf32>
    %cst = arith.constant dense<0.000000e+00> : vector<32x128xf32>
    %2 = tpu.matmul %1, %0, %cst {dimension_numbers = #tpu.dot_dimension_numbers<[1], [0], [0], [1], [0, 0, 1, 1], [], []>} : vector<32x8xf32>, vector<8x128xf32>, vector<32x128xf32> -> vector<32x128xf32>
    %cst_3 = arith.constant 0.000000e+00 : f32
    %3 = vector.broadcast %cst_3 : f32 to vector<32x128xf32>
    %4 = arith.maximumf %2, %3 : vector<32x128xf32>
    %c0_4 = arith.constant 0 : index
    %c0_5 = arith.constant 0 : index
    %5 = vector.load %arg3[%c0_4, %c0_5] : memref<72x32xf32, #tpu.memory_space<vmem>>, vector<32x32xf32>
    %cst_6 = arith.constant dense<0.000000e+00> : vector<32x128xf32>
    %6 = tpu.matmul %5, %4, %cst_6 {dimension_numbers = #tpu.dot_dimension_numbers<[1], [0], [0], [1], [0, 0, 1, 1], [], []>} : vector<32x32xf32>, vector<32x128xf32>, vector<32x128xf32> -> vector<32x128xf32>
    %cst_7 = arith.constant 0.000000e+00 : f32
    %7 = vector.broadcast %cst_7 : f32 to vector<32x128xf32>
    %8 = arith.maximumf %6, %7 : vector<32x128xf32>
    %c32 = arith.constant 32 : index
    %c0_8 = arith.constant 0 : index
    %9 = vector.load %arg3[%c32, %c0_8] : memref<72x32xf32, #tpu.memory_space<vmem>>, vector<32x32xf32>
    %cst_9 = arith.constant dense<0.000000e+00> : vector<32x128xf32>
    %10 = tpu.matmul %9, %8, %cst_9 {dimension_numbers = #tpu.dot_dimension_numbers<[1], [0], [0], [1], [0, 0, 1, 1], [], []>} : vector<32x32xf32>, vector<32x128xf32>, vector<32x128xf32> -> vector<32x128xf32>
    %cst_10 = arith.constant 0.000000e+00 : f32
    %11 = vector.broadcast %cst_10 : f32 to vector<32x128xf32>
    %12 = arith.maximumf %10, %11 : vector<32x128xf32>
    %c64 = arith.constant 64 : index
    %c0_11 = arith.constant 0 : index
    %13 = vector.load %arg3[%c64, %c0_11] : memref<72x32xf32, #tpu.memory_space<vmem>>, vector<8x32xf32>
    %cst_12 = arith.constant dense<0.000000e+00> : vector<8x128xf32>
    %14 = tpu.matmul %13, %12, %cst_12 {dimension_numbers = #tpu.dot_dimension_numbers<[1], [0], [0], [1], [0, 0, 1, 1], [], []>} : vector<8x32xf32>, vector<32x128xf32>, vector<8x128xf32> -> vector<8x128xf32>
    %c0_13 = arith.constant 0 : index
    %c0_14 = arith.constant 0 : index
    %15 = vector.load %arg4[%c0_13, %c0_14] : memref<8x128xf32, #tpu.memory_space<vmem>>, vector<8x128xf32>
    tpu.vector_store %arg4[%c0_13, %c0_14], %14 {strides = array<i32>} : memref<8x128xf32, #tpu.memory_space<vmem>>, vector<8x128xf32>,
    return
  }
  func.func @transform_0(%arg0: i32) -> (i32, i32) {
    %c0_i32 = arith.constant 0 : i32
    %c0_i32_0 = arith.constant 0 : i32
    return %c0_i32, %arg0 : i32, i32
  }
  func.func @transform_1(%arg0: i32) -> (i32, i32) {
    %c0_i32 = arith.constant 0 : i32
    %c0_i32_0 = arith.constant 0 : i32
    %c0_i32_1 = arith.constant 0 : i32
    return %c0_i32, %c0_i32_0 : i32, i32
  }
  func.func @transform_2(%arg0: i32) -> (i32, i32) {
    %c0_i32 = arith.constant 0 : i32
    %c0_i32_0 = arith.constant 0 : i32
    %c0_i32_1 = arith.constant 0 : i32
    return %c0_i32, %c0_i32_0 : i32, i32
  }
  func.func @transform_3(%arg0: i32) -> (i32, i32) {
    %c0_i32 = arith.constant 0 : i32
    %c0_i32_0 = arith.constant 0 : i32
    return %c0_i32, %arg0 : i32, i32
  }
}

</mosaic_0001>

<bundles_post_ra>
// kernel: tpu_custom_call.1
= control target key start
LH: loop header
LB: loop body
LE: loop exit
PB: predicated region body
PF: predicated region fallthrough
CT: control target
= control target key end

     0   :  { %vm20_vm0 = vcmask 64512   ;;  %s610_s0 = inlined_call_operand.vmem [shape: f32[8,128], index: 0, kind: input, shape index: {}]   ;;  %s611_s1 = inlined_call_operand.vmem [shape: f32[32,8], index: 1, kind: input, shape index: {}]   ;;  %s612_s2 = inlined_call_operand.vmem [shape: f32[72,32], index: 2, kind: input, shape index: {}]   ;;  %s613_s3 = inlined_call_operand.hbm [shape: f32[8,128], index: 3, kind: output, shape index: {}]  }
   0x1   :  { %v15_v0 = vld [vmem:[%s610_s0] sm:$0xff]  ;;  %v17_v2 = vld [vmem:[%s611_s1 + $0x8] sm:$0xff]  ;;  %v18_v3 = vld [vmem:[%s611_s1 + $0x10] sm:$0xff] }
   0x2   :  { %v16_v1 = vld [vmem:[%s611_s1] sm:$0xff]  ;;  %461 = vmatprep.subr.mxu0 %v15_v0 }
   0x3   :  { %463 = vmatprep.mubr.msk.f32.mxu0 %vm20_vm0, %v16_v1 }
   0x4   :  { %8 = vsyncpa [#allocation3], 0  ;;  %462 = vmatpush3.msra.mxu0 %v15_v0  ;;  %v19_v4 = vld [vmem:[%s611_s1 + $0x18] sm:$0xff]  ;;  %v122_v5 = vld [vmem:[%s612_s2] sm:$0xff]  ;;  %vm126_vm1 = vcmask 261120   ;;  %v533_v29 = vmov 0.0  }
   0x5   :  { %464 = vmatmul.mubr.msk.f32.vlgmr.msra.gmra.mxu0 %vm20_vm0, %v17_v2  ;;  %477 = vmatprep.mubr.msk.f32.mxu1 %vm126_vm1, %v122_v5  ;;  %v123_v14 = vld [vmem:[%s612_s2 + $0x8] sm:$0xff]  ;;  %v124_v15 = vld [vmem:[%s612_s2 + $0x10] sm:$0xff]  ;;  %v125_v16 = vld [vmem:[%s612_s2 + $0x18] sm:$0xff]  ;;  %vm534_vm2 = vmmov 0   ;;  %s535_s11 = smov [#allocation2]  }
   0x6   :  { %466 = vmatprep.mubr.msk.f32.mxu0 %vm20_vm0, %v18_v3  ;;  %v228_v17 = vld [vmem:[%s612_s2 + $0x20] sm:$0xff]  ;;  %v229_v26 = vld [vmem:[%s612_s2 + $0x28] sm:$0xff]  ;;  %v230_v27 = vld [vmem:[%s612_s2 + $0x30] sm:$0xff]  ;;  %s414_s12 = sshll.u32 %s535_s11, 4  ;;  %s415_s12 = int_to_ptr.vmem [resolvable:$true] %s414_s12 }
   0x7   :  { %v231_v28 = vld [vmem:[%s612_s2 + $0x38] sm:$0xff]  ;;  %v333_v38 = vld [vmem:[%s612_s2 + $0x40] sm:$0xff]  ;;  %s511_s13 = scalar_lea.vmem %s415_s12, 128  ;;  %p516_p1 = scmp.lt.s32.totalorder %s415_s12, %s415_s12 }
   0x8   :  { %p512_p0 = scmp.ne.s32.totalorder %s415_s12, %s511_s13  ;;  %p517_p2 = scmp.lt.s32.totalorder %s511_s13, %s511_s13 }
   0x9   :  { %467 = vmatmul.mubr.msk.f32.gmra.mxu0 %vm20_vm0, %v19_v4 }
   0xa   :  { %491 = vmatprep.mubr.msk.f32.mxu0 %vm126_vm1, %v228_v17  ;;  %p518_p3 = por %p517_p2, %p516_p1 }
   0xc   :  { %p519_p4 = pnand %p518_p3, %p512_p0 }
  0xc5   :  { %v465_v6 = vpop.f32.mrf.mxu0 }
  0xc6   :  { %v119_v12 = vmax.f32 %v465_v6, 0.0 }
  0xc7   :  { %v99_v7 = vpop.f32.mrf.mxu0 }
  0xc8   :  { %v118_v13 = vmax.f32 %v99_v7, 0.0 }
  0xc9   :  { %v468_v8 = vpop.f32.mrf.mxu0 }
  0xca   :  { %v121_v9 = vmax.f32 %v468_v8, 0.0 }
  0xcb   :  { %v109_v10 = vpop.f32.mrf.mxu0 }
  0xcc   :  { %v120_v11 = vmax.f32 %v109_v10, 0.0  ;;  %469 = vmatprep.subr.mxu1 %v121_v9 }
  0xcd   :  { %470 = vmatpush3.msra.mxu1 %v121_v9 }
  0xce   :  { %471 = vmatprep.subr.mxu1 %v120_v11 }
  0xcf   :  { %472 = vmatpush3.msra.mxu1 %v120_v11 }
  0xd0   :  { %473 = vmatprep.subr.mxu1 %v119_v12 }
  0xd1   :  { %474 = vmatpush3.msra.mxu1 %v119_v12 }
  0xd2   :  { %475 = vmatprep.subr.mxu1 %v118_v13 }
  0xd3   :  { %476 = vmatpush3.msra.mxu1 %v118_v13 }
  0xd4   :  { %478 = vmatmul.mubr.msk.f32.vlgmr.msra.gmra.mxu1 %vm126_vm1, %v123_v14  ;;  %497 = vmatprep.subr.mxu1 %v533_v29 }
  0xd5   :  { %480 = vmatprep.mubr.msk.f32.mxu1 %vm126_vm1, %v124_v15 }
  0xd8   :  { %481 = vmatmul.mubr.msk.f32.gmra.mxu1 %vm126_vm1, %v125_v16 }
  0xd9   :  { %505 = vmatprep.mubr.msk.f32.mxu1 %vm534_vm2, %v533_v29 }
 0x194   :  { %v479_v18 = vpop.f32.mrf.mxu1 }
 0x195   :  { %v225_v24 = vmax.f32 %v479_v18, 0.0 }
 0x196   :  { %v205_v19 = vpop.f32.mrf.mxu1 }
 0x197   :  { %v224_v25 = vmax.f32 %v205_v19, 0.0 }
 0x198   :  { %v482_v20 = vpop.f32.mrf.mxu1 }
 0x199   :  { %v227_v21 = vmax.f32 %v482_v20, 0.0 }
 0x19a   :  { %v215_v22 = vpop.f32.mrf.mxu1 }
 0x19b   :  { %v226_v23 = vmax.f32 %v215_v22, 0.0  ;;  %483 = vmatprep.subr.mxu0 %v227_v21 }
 0x19c   :  { %484 = vmatpush3.msra.mxu0 %v227_v21 }
 0x19d   :  { %485 = vmatprep.subr.mxu0 %v226_v23 }
 0x19e   :  { %486 = vmatpush3.msra.mxu0 %v226_v23 }
 0x19f   :  { %487 = vmatprep.subr.mxu0 %v225_v24 }
 0x1a0   :  { %488 = vmatpush3.msra.mxu0 %v225_v24 }
 0x1a1   :  { %489 = vmatprep.subr.mxu0 %v224_v25 }
 0x1a2   :  { %490 = vmatpush3.msra.mxu0 %v224_v25 }
 0x1a3   :  { %492 = vmatmul.mubr.msk.f32.vlgmr.msra.gmra.mxu0 %vm126_vm1, %v229_v26 }
 0x1a4   :  { %494 = vmatprep.mubr.msk.f32.mxu0 %vm126_vm1, %v230_v27 }
 0x1a7   :  { %495 = vmatmul.mubr.msk.f32.gmra.mxu0 %vm126_vm1, %v231_v28 }
 0x263   :  { %v493_v30 = vpop.f32.mrf.mxu0 }
 0x264   :  { %v330_v36 = vmax.f32 %v493_v30, 0.0 }
 0x265   :  { %v310_v31 = vpop.f32.mrf.mxu0 }
 0x266   :  { %v329_v37 = vmax.f32 %v310_v31, 0.0 }
 0x267   :  { %v496_v32 = vpop.f32.mrf.mxu0 }
 0x268   :  { %v332_v33 = vmax.f32 %v496_v32, 0.0 }
 0x269   :  { %v320_v34 = vpop.f32.mrf.mxu0 }
 0x26a   :  { %v331_v35 = vmax.f32 %v320_v34, 0.0  ;;  %498 = vmatpush3.msra.mxu1 %v332_v33 }
 0x26b   :  { %499 = vmatprep.subr.mxu1 %v533_v29 }
 0x26c   :  { %500 = vmatpush3.msra.mxu1 %v331_v35 }
 0x26d   :  { %501 = vmatprep.subr.mxu1 %v533_v29 }
 0x26e   :  { %502 = vmatpush3.msra.mxu1 %v330_v36 }
 0x26f   :  { %503 = vmatprep.subr.mxu1 %v533_v29 }
 0x270   :  { %504 = vmatpush3.msra.mxu1 %v329_v37 }
 0x271   :  { %506 = vmatmul.mubr.msk.f32.vlgmr.msra.gmra.mxu1 %vm126_vm1, %v333_v38 }
 0x331   :  { %v403_v39 = vpop.f32.mrf.mxu1 }
 0x332   :  { %407 = vst [vmem:[#allocation2] sm:$0xff] %v403_v39 }
 0x333   :  { %v507_v40 = vpop.f32.mrf.mxu1 }
 0x334   :  { %522 = shalt.err (!%p519_p4)
}
 0x335   :  { %417 = dma.vmem_to_hbm [thread:$0]  %s415_s12, 128, %s613_s3, [#allocation3]  }
 0x336   :  { %531 = dma.done.wait [#allocation3], 128  }
 0x337   :  { %532 = vsyncadd [#allocation3], 4294967168 }
 0x338   :  { %421 = vsyncpa [#allocation3], 1 }

</bundles_post_ra>
